<compile_context>
chip_gen: v6e
topology: v6e:2x2x1
jax: 0.10.0
libtpu: 0.0.40
codegen_flags: <defaults>
</compile_context>

<pallas_src>
import functools

import jax
import jax.numpy as jnp
from jax.experimental import pallas as pl
from jax.experimental.pallas import tpu as pltpu


def _resblock_kernel(x_ref, w1_ref, b1_ref, w2_ref, b2_ref, o_ref, pbuf_ref,
                     *, K, pad, W, HW, C, n_img, scale):
    # x_ref:    (n_img, C, HW)  f32  images; channels in sublanes, pixels in lanes
    # w*_ref:   (C, K*K*C)      bf16 flattened conv weights (im2col tap order)
    # b*_ref:   (C, 1)          f32
    # o_ref:    (n_img, C, HW)  f32
    # pbuf_ref: (C, M)          f32  scratch: flat padded row buffer, reused for
    #                                conv1's input and conv2's input of every image
    border = pad * (W + 1)
    M = pbuf_ref.shape[1]

    # Column-validity masks, generated in-kernel (no DMA'd mask input) and
    # hoisted above both convs and all taps.  For horizontal tap offset
    # dx = kw - pad, a packed pixel at x-coordinate `col` is a valid read iff
    # 0 <= col + dx < W.
    col = jax.lax.broadcasted_iota(jnp.int32, (C, HW), 1) % W
    col_ok = [None if kw == pad else
              ((col + (kw - pad) >= 0) & (col + (kw - pad) < W))
              for kw in range(K)]

    # Zero only the thin pad margins; the interior is fully overwritten for
    # every image.  Re-done every grid step (not gated on program_id == 0) so
    # it stays correct when the "parallel" batch axis is split across cores.
    pbuf_ref[:, 0:border] = jnp.zeros((C, border), pbuf_ref.dtype)
    pbuf_ref[:, border + HW:] = jnp.zeros((C, M - border - HW), pbuf_ref.dtype)

    def conv(w_ref):
        # Flat padded-row-buffer addressing: tap (kh, kw) of output pixel p
        # reads flat index border + p + (kh-pad)*W + (kw-pad); extreme reach is
        # +/- pad*(W+1), exactly the zero margin on each side.  The only
        # out-of-row reads that land back inside valid data are corner taps
        # that are simultaneously column-OOB and therefore zeroed by col_ok.
        taps = []
        for kh in range(K):
            for kw in range(K):
                s = kh * W + kw                          # static lane offset
                patch = pbuf_ref[:, s:s + HW]            # contiguous lane slice
                if col_ok[kw] is not None:
                    patch = jnp.where(col_ok[kw], patch, 0.0)   # f32 VPU math
                taps.append(patch)
        # Build the (K*K*C, HW) im2col operand in registers (no VMEM scratch),
        # cast once to bf16, single MXU matmul with f32 accumulation.
        xcol = jnp.concatenate(taps, axis=0).astype(jnp.bfloat16)
        return jnp.dot(w_ref[...], xcol, preferred_element_type=jnp.float32)

    # Unrolled loop over the images in this grid step (amortizes the per-step
    # pipeline overhead; each image is one lane-dense (C, HW) slab).
    for im in range(n_img):
        x_im = x_ref[im]                                          # (C, HW) f32

        # conv1 + bias + relu  (epilogue math in f32 on the VPU)
        pbuf_ref[:, border:border + HW] = x_im
        h = jnp.maximum(conv(w1_ref) + b1_ref[...], 0.0)

        # conv2 + bias  (reuse the same padded buffer)
        pbuf_ref[:, border:border + HW] = h
        h2 = conv(w2_ref) + b2_ref[...]

        # residual: out = x + scale * conv2(relu(conv1(x)))  — lane-dense store
        o_ref[im] = (x_im + scale * h2).astype(o_ref.dtype)


def _vmem_limit_bytes(n_img, C, HW, K, M):
    f32, bf16 = 4, 2
    blk_io = n_img * C * HW * f32                 # x block / out block
    blk_w = C * (K * K * C) * bf16                # one weight matrix
    blk_b = C * f32                               # one bias
    scratch = C * M * f32                         # flat padded row buffer
    # double-buffered pipeline blocks + resident scratch, with generous
    # headroom for compiler-internal scratch; clamp to v7x's 64 MiB VMEM.
    est = 2 * (2 * blk_io + 2 * blk_w + 2 * blk_b) + scratch
    return int(min(max(4 * est, 16 * 1024 * 1024), 64 * 1024 * 1024))


def resblock_pallas(x_nchw, w1, b1, w2, b2, scale, images_per_step=None):
    """x_nchw: (B, C, H, W); w*: (Cout, Cin, K, K) PyTorch layout; b*: (Cout,)."""
    B, C, H, W = x_nchw.shape
    K = w1.shape[-1]
    pad = K // 2
    HW = H * W
    border = pad * (W + 1)
    M = HW + 2 * border
    # Invariant the flat padded buffer relies on (see conv() in the kernel):
    # the zero margin on each side must cover the maximal tap reach pad*(W+1).
    assert border == pad * (W + 1) and M == HW + 2 * border

    if images_per_step is None:
        # Fold batch to amortize per-grid-step overhead, but keep >= 2 grid
        # steps on the "parallel" axis so both v7x TensorCores get work.
        images_per_step = max(1, B // 2)
    images_per_step = max(1, min(images_per_step, B))
    while B % images_per_step:
        images_per_step -= 1
    n_img = images_per_step

    # Free views only — no transposes, no host-side spatial padding of x.
    x_flat = x_nchw.reshape(B, C, HW)

    # (Cout, Cin, K, K) -> (Cout, K, K, Cin) -> (Cout, K*K*Cin): bf16 MXU operands
    # whose column order matches the kernel's tap order (kh-major, kw, cin).
    w1_f = jnp.transpose(w1, (0, 2, 3, 1)).reshape(C, K * K * C).astype(jnp.bfloat16)
    w2_f = jnp.transpose(w2, (0, 2, 3, 1)).reshape(C, K * K * C).astype(jnp.bfloat16)
    b1_c = b1.reshape(C, 1).astype(jnp.float32)
    b2_c = b2.reshape(C, 1).astype(jnp.float32)

    kernel = functools.partial(_resblock_kernel, K=K, pad=pad, W=W, HW=HW, C=C,
                               n_img=n_img, scale=float(scale))

    out_flat = pl.pallas_call(
        kernel,
        out_shape=jax.ShapeDtypeStruct((B, C, HW), x_nchw.dtype),
        grid_spec=pltpu.PrefetchScalarGridSpec(
            num_scalar_prefetch=0,
            grid=(B // n_img,),
            in_specs=[
                pl.BlockSpec((n_img, C, HW), lambda i: (i, 0, 0)),   # x
                pl.BlockSpec((C, K * K * C), lambda i: (0, 0)),      # w1
                pl.BlockSpec((C, 1), lambda i: (0, 0)),              # b1
                pl.BlockSpec((C, K * K * C), lambda i: (0, 0)),      # w2
                pl.BlockSpec((C, 1), lambda i: (0, 0)),              # b2
            ],
            out_specs=pl.BlockSpec((n_img, C, HW), lambda i: (i, 0, 0)),
            scratch_shapes=[
                pltpu.VMEM((C, M), jnp.float32),      # flat padded row buffer
            ],
        ),
        compiler_params=pltpu.CompilerParams(
            dimension_semantics=("parallel",),
            vmem_limit_bytes=_vmem_limit_bytes(n_img, C, HW, K, M),
        ),
    )(x_flat, w1_f, b1_c, w2_f, b2_c)

    return out_flat.reshape(B, C, H, W)


def resblock_ref(x_nchw, w1, b1, w2, b2, scale):
    """Pure-JAX reference (lax conv, NCHW, f32) mirroring the PyTorch module."""
    dn = jax.lax.conv_dimension_numbers(x_nchw.shape, w1.shape,
                                        ("NCHW", "OIHW", "NCHW"))
    pad = w1.shape[-1] // 2

    def conv(x, w, b):
        y = jax.lax.conv_general_dilated(
            x, w, window_strides=(1, 1),
            padding=[(pad, pad), (pad, pad)], dimension_numbers=dn)
        return y + b.reshape(1, -1, 1, 1)

    h = jax.nn.relu(conv(x_nchw, w1, b1))
    h = conv(h, w2, b2)
    return x_nchw + h * scale


if __name__ == "__main__":
    # Small shapes consistent with the module: dim=4, kernel_size=3.
    B, C, H, W = 2, 4, 16, 16
    K = 3
    scale = 0.5

    key = jax.random.PRNGKey(0)
    kx, k1, k2, k3, k4 = jax.random.split(key, 5)
    x = jax.random.normal(kx, (B, C, H, W), dtype=jnp.float32)
    w1 = jax.random.normal(k1, (C, C, K, K), dtype=jnp.float32) * 0.1
    b1 = jax.random.normal(k2, (C,), dtype=jnp.float32) * 0.1
    w2 = jax.random.normal(k3, (C, C, K, K), dtype=jnp.float32) * 0.1
    b2 = jax.random.normal(k4, (C,), dtype=jnp.float32) * 0.1

    out = jax.block_until_ready(resblock_pallas(x, w1, b1, w2, b2, scale))
    ref = resblock_ref(x, w1, b1, w2, b2, scale)

    assert out.shape == (B, C, H, W)
    # bf16 MXU operands (f32 accumulation / f32 residual path) => looser
    # tolerance than pure f32, as accepted by the review.
    assert jnp.allclose(out, ref, atol=5e-2, rtol=5e-2), (
        "mismatch vs reference, max abs err = "
        f"{float(jnp.max(jnp.abs(out - ref)))}")

    print("KERNEL_OK")
</pallas_src>

<mosaic_0001>
module attributes {stable_mosaic.version = 11 : i64} {
  func.func @_resblock_kernel(%arg0: i32, %arg1: memref<1x4x256xf32, #tpu.memory_space<vmem>>, %arg2: memref<4x36xbf16, #tpu.memory_space<vmem>>, %arg3: memref<4x1xf32, #tpu.memory_space<vmem>>, %arg4: memref<4x36xbf16, #tpu.memory_space<vmem>>, %arg5: memref<4x1xf32, #tpu.memory_space<vmem>>, %arg6: memref<1x4x256xf32, #tpu.memory_space<vmem>>, %arg7: memref<4x290xf32, #tpu.memory_space<vmem>>) attributes {dimension_semantics = [#tpu.dimension_semantics<parallel>], iteration_bounds = array<i64: 2>, scalar_prefetch = 0 : i64, scratch_operands = 1 : i64, tpu.core_type = #tpu.core_type<tc>, window_params = [{transform_indices = @transform_0, window_bounds = array<i64: 1, 4, 256>}, {pipeline_mode = #tpu.pipeline_mode<synchronous>, transform_indices = @transform_1, window_bounds = array<i64: 4, 36>}, {pipeline_mode = #tpu.pipeline_mode<synchronous>, transform_indices = @transform_2, window_bounds = array<i64: 4, 1>}, {pipeline_mode = #tpu.pipeline_mode<synchronous>, transform_indices = @transform_3, window_bounds = array<i64: 4, 36>}, {pipeline_mode = #tpu.pipeline_mode<synchronous>, transform_indices = @transform_4, window_bounds = array<i64: 4, 1>}, {transform_indices = @transform_5, window_bounds = array<i64: 1, 4, 256>}]} {
    %0 = tpu.iota {dimensions = array<i32: 1>} : vector<4x256xi32>
    %c16_i32 = arith.constant 16 : i32
    %c0_i32 = arith.constant 0 : i32
    %1 = arith.cmpi eq, %c16_i32, %c0_i32 : i32
    %c1_i32 = arith.constant 1 : i32
    %2 = arith.select %1, %c1_i32, %c16_i32 : i32
    %3 = vector.broadcast %2 : i32 to vector<4x256xi32>
    %4 = arith.remsi %0, %3 : vector<4x256xi32>
    %c0_i32_0 = arith.constant 0 : i32
    %5 = vector.broadcast %c0_i32_0 : i32 to vector<4x256xi32>
    %6 = arith.cmpi ne, %4, %5 : vector<4x256xi32>
    %c0_i32_1 = arith.constant 0 : i32
    %7 = vector.broadcast %c0_i32_1 : i32 to vector<4x256xi32>
    %8 = arith.cmpi slt, %4, %7 : vector<4x256xi32>
    %c0_i32_2 = arith.constant 0 : i32
    %9 = arith.cmpi slt, %2, %c0_i32_2 : i32
    %10 = vector.broadcast %9 : i1 to vector<4x256xi1>
    %11 = vector.broadcast %10 : vector<4x256xi1> to vector<4x256xi1>
    %12 = arith.xori %8, %11 : vector<4x256xi1>
    %13 = arith.andi %12, %6 : vector<4x256xi1>
    %14 = vector.broadcast %2 : i32 to vector<4x256xi32>
    %15 = arith.addi %4, %14 : vector<4x256xi32>
    %16 = arith.select %13, %15, %4 : vector<4x256xi1>, vector<4x256xi32>
    %c-1_i32 = arith.constant -1 : i32
    %17 = vector.broadcast %c-1_i32 : i32 to vector<4x256xi32>
    %18 = arith.addi %16, %17 : vector<4x256xi32>
    %c0_i32_3 = arith.constant 0 : i32
    %19 = vector.broadcast %c0_i32_3 : i32 to vector<4x256xi32>
    %20 = arith.cmpi sge, %18, %19 : vector<4x256xi32>
    %c-1_i32_4 = arith.constant -1 : i32
    %21 = vector.broadcast %c-1_i32_4 : i32 to vector<4x256xi32>
    %22 = arith.addi %16, %21 : vector<4x256xi32>
    %c16_i32_5 = arith.constant 16 : i32
    %23 = vector.broadcast %c16_i32_5 : i32 to vector<4x256xi32>
    %24 = arith.cmpi slt, %22, %23 : vector<4x256xi32>
    %25 = arith.andi %20, %24 : vector<4x256xi1>
    %c1_i32_6 = arith.constant 1 : i32
    %26 = vector.broadcast %c1_i32_6 : i32 to vector<4x256xi32>
    %27 = arith.addi %16, %26 : vector<4x256xi32>
    %c0_i32_7 = arith.constant 0 : i32
    %28 = vector.broadcast %c0_i32_7 : i32 to vector<4x256xi32>
    %29 = arith.cmpi sge, %27, %28 : vector<4x256xi32>
    %c1_i32_8 = arith.constant 1 : i32
    %30 = vector.broadcast %c1_i32_8 : i32 to vector<4x256xi32>
    %31 = arith.addi %16, %30 : vector<4x256xi32>
    %c16_i32_9 = arith.constant 16 : i32
    %32 = vector.broadcast %c16_i32_9 : i32 to vector<4x256xi32>
    %33 = arith.cmpi slt, %31, %32 : vector<4x256xi32>
    %34 = arith.andi %29, %33 : vector<4x256xi1>
    %cst = arith.constant 0.000000e+00 : f32
    %35 = vector.broadcast %cst : f32 to vector<4x17xf32>
    %c0 = arith.constant 0 : index
    %c0_10 = arith.constant 0 : index
    %36 = vector.load %arg7[%c0, %c0_10] : memref<4x290xf32, #tpu.memory_space<vmem>>, vector<4x17xf32>
    tpu.vector_store %arg7[%c0, %c0_10], %35 {strides = array<i32>} : memref<4x290xf32, #tpu.memory_space<vmem>>, vector<4x17xf32>,
    %cst_11 = arith.constant 0.000000e+00 : f32
    %37 = vector.broadcast %cst_11 : f32 to vector<4x17xf32>
    %c0_12 = arith.constant 0 : index
    %c273 = arith.constant 273 : index
    %38 = vector.load %arg7[%c0_12, %c273] : memref<4x290xf32, #tpu.memory_space<vmem>>, vector<4x17xf32>
    tpu.vector_store %arg7[%c0_12, %c273], %37 {strides = array<i32>} : memref<4x290xf32, #tpu.memory_space<vmem>>, vector<4x17xf32>,
    %c0_13 = arith.constant 0 : index
    %c0_14 = arith.constant 0 : index
    %c0_15 = arith.constant 0 : index
    %39 = vector.load %arg1[%c0_13, %c0_14, %c0_15] : memref<1x4x256xf32, #tpu.memory_space<vmem>>, vector<1x4x256xf32>
    %40 = vector.shape_cast %39 : vector<1x4x256xf32> to vector<4x256xf32>
    %c0_16 = arith.constant 0 : index
    %c17 = arith.constant 17 : index
    %41 = vector.load %arg7[%c0_16, %c17] : memref<4x290xf32, #tpu.memory_space<vmem>>, vector<4x256xf32>
    tpu.vector_store %arg7[%c0_16, %c17], %40 {strides = array<i32>} : memref<4x290xf32, #tpu.memory_space<vmem>>, vector<4x256xf32>,
    %c0_17 = arith.constant 0 : index
    %c0_18 = arith.constant 0 : index
    %42 = vector.load %arg7[%c0_17, %c0_18] : memref<4x290xf32, #tpu.memory_space<vmem>>, vector<4x256xf32>
    %cst_19 = arith.constant 0.000000e+00 : f32
    %43 = vector.broadcast %cst_19 : f32 to vector<4x256xf32>
    %44 = arith.select %25, %42, %43 : vector<4x256xi1>, vector<4x256xf32>
    %c0_20 = arith.constant 0 : index
    %c1 = arith.constant 1 : index
    %45 = vector.load %arg7[%c0_20, %c1] : memref<4x290xf32, #tpu.memory_space<vmem>>, vector<4x256xf32>
    %c0_21 = arith.constant 0 : index
    %c2 = arith.constant 2 : index
    %46 = vector.load %arg7[%c0_21, %c2] : memref<4x290xf32, #tpu.memory_space<vmem>>, vector<4x256xf32>
    %cst_22 = arith.constant 0.000000e+00 : f32
    %47 = vector.broadcast %cst_22 : f32 to vector<4x256xf32>
    %48 = arith.select %34, %46, %47 : vector<4x256xi1>, vector<4x256xf32>
    %c0_23 = arith.constant 0 : index
    %c16 = arith.constant 16 : index
    %49 = vector.load %arg7[%c0_23, %c16] : memref<4x290xf32, #tpu.memory_space<vmem>>, vector<4x256xf32>
    %cst_24 = arith.constant 0.000000e+00 : f32
    %50 = vector.broadcast %cst_24 : f32 to vector<4x256xf32>
    %51 = arith.select %25, %49, %50 : vector<4x256xi1>, vector<4x256xf32>
    %c0_25 = arith.constant 0 : index
    %c17_26 = arith.constant 17 : index
    %52 = vector.load %arg7[%c0_25, %c17_26] : memref<4x290xf32, #tpu.memory_space<vmem>>, vector<4x256xf32>
    %c0_27 = arith.constant 0 : index
    %c18 = arith.constant 18 : index
    %53 = vector.load %arg7[%c0_27, %c18] : memref<4x290xf32, #tpu.memory_space<vmem>>, vector<4x256xf32>
    %cst_28 = arith.constant 0.000000e+00 : f32
    %54 = vector.broadcast %cst_28 : f32 to vector<4x256xf32>
    %55 = arith.select %34, %53, %54 : vector<4x256xi1>, vector<4x256xf32>
    %c0_29 = arith.constant 0 : index
    %c32 = arith.constant 32 : index
    %56 = vector.load %arg7[%c0_29, %c32] : memref<4x290xf32, #tpu.memory_space<vmem>>, vector<4x256xf32>
    %cst_30 = arith.constant 0.000000e+00 : f32
    %57 = vector.broadcast %cst_30 : f32 to vector<4x256xf32>
    %58 = arith.select %25, %56, %57 : vector<4x256xi1>, vector<4x256xf32>
    %c0_31 = arith.constant 0 : index
    %c33 = arith.constant 33 : index
    %59 = vector.load %arg7[%c0_31, %c33] : memref<4x290xf32, #tpu.memory_space<vmem>>, vector<4x256xf32>
    %c0_32 = arith.constant 0 : index
    %c34 = arith.constant 34 : index
    %60 = vector.load %arg7[%c0_32, %c34] : memref<4x290xf32, #tpu.memory_space<vmem>>, vector<4x256xf32>
    %cst_33 = arith.constant 0.000000e+00 : f32
    %61 = vector.broadcast %cst_33 : f32 to vector<4x256xf32>
    %62 = arith.select %34, %60, %61 : vector<4x256xi1>, vector<4x256xf32>
    %63 = tpu.concatenate %44, %45, %48, %51, %52, %55, %58, %59, %62 in 0 : vector<4x256xf32>, vector<4x256xf32>, vector<4x256xf32>, vector<4x256xf32>, vector<4x256xf32>, vector<4x256xf32>, vector<4x256xf32>, vector<4x256xf32>, vector<4x256xf32> -> vector<36x256xf32>
    %64 = arith.truncf %63 : vector<36x256xf32> to vector<36x256xbf16>
    %c0_34 = arith.constant 0 : index
    %c0_35 = arith.constant 0 : index
    %65 = vector.load %arg2[%c0_34, %c0_35] : memref<4x36xbf16, #tpu.memory_space<vmem>>, vector<4x36xbf16>
    %cst_36 = arith.constant dense<0.000000e+00> : vector<4x256xf32>
    %66 = tpu.matmul %65, %64, %cst_36 {dimension_numbers = #tpu.dot_dimension_numbers<[1], [0], [0], [1], [0, 0, 1, 1], [], []>} : vector<4x36xbf16>, vector<36x256xbf16>, vector<4x256xf32> -> vector<4x256xf32>
    %c0_37 = arith.constant 0 : index
    %c0_38 = arith.constant 0 : index
    %67 = vector.load %arg3[%c0_37, %c0_38] : memref<4x1xf32, #tpu.memory_space<vmem>>, vector<4x1xf32>
    %68 = vector.broadcast %67 : vector<4x1xf32> to vector<4x256xf32>
    %69 = arith.addf %66, %68 : vector<4x256xf32>
    %cst_39 = arith.constant 0.000000e+00 : f32
    %70 = vector.broadcast %cst_39 : f32 to vector<4x256xf32>
    %71 = arith.maximumf %69, %70 : vector<4x256xf32>
    %c0_40 = arith.constant 0 : index
    %c17_41 = arith.constant 17 : index
    %72 = vector.load %arg7[%c0_40, %c17_41] : memref<4x290xf32, #tpu.memory_space<vmem>>, vector<4x256xf32>
    tpu.vector_store %arg7[%c0_40, %c17_41], %71 {strides = array<i32>} : memref<4x290xf32, #tpu.memory_space<vmem>>, vector<4x256xf32>,
    %c0_42 = arith.constant 0 : index
    %c0_43 = arith.constant 0 : index
    %73 = vector.load %arg7[%c0_42, %c0_43] : memref<4x290xf32, #tpu.memory_space<vmem>>, vector<4x256xf32>
    %cst_44 = arith.constant 0.000000e+00 : f32
    %74 = vector.broadcast %cst_44 : f32 to vector<4x256xf32>
    %75 = arith.select %25, %73, %74 : vector<4x256xi1>, vector<4x256xf32>
    %c0_45 = arith.constant 0 : index
    %c1_46 = arith.constant 1 : index
    %76 = vector.load %arg7[%c0_45, %c1_46] : memref<4x290xf32, #tpu.memory_space<vmem>>, vector<4x256xf32>
    %c0_47 = arith.constant 0 : index
    %c2_48 = arith.constant 2 : index
    %77 = vector.load %arg7[%c0_47, %c2_48] : memref<4x290xf32, #tpu.memory_space<vmem>>, vector<4x256xf32>
    %cst_49 = arith.constant 0.000000e+00 : f32
    %78 = vector.broadcast %cst_49 : f32 to vector<4x256xf32>
    %79 = arith.select %34, %77, %78 : vector<4x256xi1>, vector<4x256xf32>
    %c0_50 = arith.constant 0 : index
    %c16_51 = arith.constant 16 : index
    %80 = vector.load %arg7[%c0_50, %c16_51] : memref<4x290xf32, #tpu.memory_space<vmem>>, vector<4x256xf32>
    %cst_52 = arith.constant 0.000000e+00 : f32
    %81 = vector.broadcast %cst_52 : f32 to vector<4x256xf32>
    %82 = arith.select %25, %80, %81 : vector<4x256xi1>, vector<4x256xf32>
    %c0_53 = arith.constant 0 : index
    %c17_54 = arith.constant 17 : index
    %83 = vector.load %arg7[%c0_53, %c17_54] : memref<4x290xf32, #tpu.memory_space<vmem>>, vector<4x256xf32>
    %c0_55 = arith.constant 0 : index
    %c18_56 = arith.constant 18 : index
    %84 = vector.load %arg7[%c0_55, %c18_56] : memref<4x290xf32, #tpu.memory_space<vmem>>, vector<4x256xf32>
    %cst_57 = arith.constant 0.000000e+00 : f32
    %85 = vector.broadcast %cst_57 : f32 to vector<4x256xf32>
    %86 = arith.select %34, %84, %85 : vector<4x256xi1>, vector<4x256xf32>
    %c0_58 = arith.constant 0 : index
    %c32_59 = arith.constant 32 : index
    %87 = vector.load %arg7[%c0_58, %c32_59] : memref<4x290xf32, #tpu.memory_space<vmem>>, vector<4x256xf32>
    %cst_60 = arith.constant 0.000000e+00 : f32
    %88 = vector.broadcast %cst_60 : f32 to vector<4x256xf32>
    %89 = arith.select %25, %87, %88 : vector<4x256xi1>, vector<4x256xf32>
    %c0_61 = arith.constant 0 : index
    %c33_62 = arith.constant 33 : index
    %90 = vector.load %arg7[%c0_61, %c33_62] : memref<4x290xf32, #tpu.memory_space<vmem>>, vector<4x256xf32>
    %c0_63 = arith.constant 0 : index
    %c34_64 = arith.constant 34 : index
    %91 = vector.load %arg7[%c0_63, %c34_64] : memref<4x290xf32, #tpu.memory_space<vmem>>, vector<4x256xf32>
    %cst_65 = arith.constant 0.000000e+00 : f32
    %92 = vector.broadcast %cst_65 : f32 to vector<4x256xf32>
    %93 = arith.select %34, %91, %92 : vector<4x256xi1>, vector<4x256xf32>
    %94 = tpu.concatenate %75, %76, %79, %82, %83, %86, %89, %90, %93 in 0 : vector<4x256xf32>, vector<4x256xf32>, vector<4x256xf32>, vector<4x256xf32>, vector<4x256xf32>, vector<4x256xf32>, vector<4x256xf32>, vector<4x256xf32>, vector<4x256xf32> -> vector<36x256xf32>
    %95 = arith.truncf %94 : vector<36x256xf32> to vector<36x256xbf16>
    %c0_66 = arith.constant 0 : index
    %c0_67 = arith.constant 0 : index
    %96 = vector.load %arg4[%c0_66, %c0_67] : memref<4x36xbf16, #tpu.memory_space<vmem>>, vector<4x36xbf16>
    %cst_68 = arith.constant dense<0.000000e+00> : vector<4x256xf32>
    %97 = tpu.matmul %96, %95, %cst_68 {dimension_numbers = #tpu.dot_dimension_numbers<[1], [0], [0], [1], [0, 0, 1, 1], [], []>} : vector<4x36xbf16>, vector<36x256xbf16>, vector<4x256xf32> -> vector<4x256xf32>
    %c0_69 = arith.constant 0 : index
    %c0_70 = arith.constant 0 : index
    %98 = vector.load %arg5[%c0_69, %c0_70] : memref<4x1xf32, #tpu.memory_space<vmem>>, vector<4x1xf32>
    %99 = vector.broadcast %98 : vector<4x1xf32> to vector<4x256xf32>
    %100 = arith.addf %97, %99 : vector<4x256xf32>
    %cst_71 = arith.constant 5.000000e-01 : f32
    %101 = vector.broadcast %cst_71 : f32 to vector<4x256xf32>
    %102 = arith.mulf %101, %100 : vector<4x256xf32>
    %103 = arith.addf %40, %102 : vector<4x256xf32>
    %c0_72 = arith.constant 0 : index
    %c0_73 = arith.constant 0 : index
    %c0_74 = arith.constant 0 : index
    %104 = vector.load %arg6[%c0_72, %c0_73, %c0_74] : memref<1x4x256xf32, #tpu.memory_space<vmem>>, vector<1x4x256xf32>
    %105 = vector.shape_cast %104 : vector<1x4x256xf32> to vector<4x256xf32>
    %106 = vector.shape_cast %103 : vector<4x256xf32> to vector<1x4x256xf32>
    tpu.vector_store %arg6[%c0_72, %c0_73, %c0_74], %106 {strides = array<i32>} : memref<1x4x256xf32, #tpu.memory_space<vmem>>, vector<1x4x256xf32>,
    return
  }
  func.func @transform_0(%arg0: i32) -> (i32, i32, i32) {
    %c0_i32 = arith.constant 0 : i32
    %c0_i32_0 = arith.constant 0 : i32
    %c0_i32_1 = arith.constant 0 : i32
    return %arg0, %c0_i32, %c0_i32_0 : i32, i32, i32
  }
  func.func @transform_1(%arg0: i32) -> (i32, i32) {
    %c0_i32 = arith.constant 0 : i32
    %c0_i32_0 = arith.constant 0 : i32
    %c0_i32_1 = arith.constant 0 : i32
    return %c0_i32, %c0_i32_0 : i32, i32
  }
  func.func @transform_2(%arg0: i32) -> (i32, i32) {
    %c0_i32 = arith.constant 0 : i32
    %c0_i32_0 = arith.constant 0 : i32
    %c0_i32_1 = arith.constant 0 : i32
    return %c0_i32, %c0_i32_0 : i32, i32
  }
  func.func @transform_3(%arg0: i32) -> (i32, i32) {
    %c0_i32 = arith.constant 0 : i32
    %c0_i32_0 = arith.constant 0 : i32
    %c0_i32_1 = arith.constant 0 : i32
    return %c0_i32, %c0_i32_0 : i32, i32
  }
  func.func @transform_4(%arg0: i32) -> (i32, i32) {
    %c0_i32 = arith.constant 0 : i32
    %c0_i32_0 = arith.constant 0 : i32
    %c0_i32_1 = arith.constant 0 : i32
    return %c0_i32, %c0_i32_0 : i32, i32
  }
  func.func @transform_5(%arg0: i32) -> (i32, i32, i32) {
    %c0_i32 = arith.constant 0 : i32
    %c0_i32_0 = arith.constant 0 : i32
    %c0_i32_1 = arith.constant 0 : i32
    return %arg0, %c0_i32, %c0_i32_0 : i32, i32, i32
  }
}

</mosaic_0001>

<bundles_post_ra>
// kernel: tpu_custom_call.1
= control target key start
LH: loop header
LB: loop body
LE: loop exit
PB: predicated region body
PF: predicated region fallthrough
CT: control target
= control target key end

     0   :  { %10 = vsyncpa [#allocation4], 0  ;;  %s1448_s0 = inlined_call_operand.hbm [shape: f32[2,4,256], index: 0, kind: input, shape index: {}]   ;;  %s1449_s1 = inlined_call_operand.vmem [shape: bf16[4,36], index: 1, kind: input, shape index: {}]   ;;  %s1450_s2 = inlined_call_operand.vmem [shape: f32[4,1], index: 2, kind: input, shape index: {}]   ;;  %s1451_s3 = inlined_call_operand.vmem [shape: bf16[4,36], index: 3, kind: input, shape index: {}]   ;;  %s1452_s4 = inlined_call_operand.vmem [shape: f32[4,1], index: 4, kind: input, shape index: {}]   ;;  %s1453_s5 = inlined_call_operand.hbm [shape: f32[2,4,256], index: 5, kind: output, shape index: {}]  }
   0x1   :  { %12 = vsyncpa [#allocation4 + $0x1], 0 }
   0x2   :  { %13 = vsyncpa [#allocation5], 0 }
   0x3   :  { %15 = vsyncpa [#allocation5 + $0x1], 0  ;;  %s1088_s18 = smov 0   ;;  %s1090_s19 = smov 0  }
   0x4   :  { %s1092_s20 = smov 0   ;;  %s1094_s21 = smov 0  }
   0x5 LB: > { %s1109_s22 = sadd.s32 4294967295, %s1043_s21   ;;  %s786_s23 = sadd.s32 4294967294, %s1043_s21   ;;  %s1043_s21 = sphi %s1094_s21, %s1478_s21   ;;  %s1039_s20 = sphi %s1092_s20, %s1477_s20   ;;  %s1035_s19 = sphi %s1090_s19, %s1476_s19   ;;  %s1031_s18 = sphi %s1088_s18, %s1475_s18  }
   0x6   : > { %s1113_s24 = sadd.s32 1, %s1043_s21   ;;  %s28_s25 = sadd.s32 1, %s1039_s20 }
   0x7   : > { %s25_s26 = ssub.s32 %s1043_s21, %s1113_s24  ;;  %p35_p0 = scmp.ne.s32.totalorder %s1039_s20, %s1035_s19 }
   0x8   : > { %p26_p1 = scmp.eq.s32.totalorder %s25_s26, 0  ;;  %p36_p2 = scmp.eq.s32.totalorder %s1043_s21, 0 }
   0x9   : > { %p41_p3 = scmp.ne.s32.totalorder %s1035_s19, %s1031_s18  ;;  %p42_p4 = scmp.eq.s32.totalorder %s1109_s22, 0 }
   0xa   : > { %s1125_s27 = scalar_select %p26_p1, %s1039_s20, %s28_s25  }
   0xb   : > { %p1127_p5 = por %p36_p2, %p35_p0  ;;  %p1131_p6 = por %p42_p4, %p41_p3 }
   0xc   : > { %p149_p7 = scmp.eq.s32.totalorder %s1109_s22, 1  ;;  %p155_p8 = scmp.eq.s32.totalorder %s786_s23, 1 }
   0xd   : > { %s1459_s29 = scalar_select %p1131_p6, 1, 0 }
   0xe   : > { %p818_p10 = scmp.lt.s32.totalorder %s1043_s21, 2  ;;  %p1138_p11 = por %p149_p7, %p35_p0 }
   0xf   : > { %p1142_p12 = por %p155_p8, %p41_p3  ;;  %s187_s7 = sand.u32 1, %s1039_s20  }
  0x10   : > { %s1460_s30 = scalar_select %p1138_p11, 1, 0 }
  0x11   : > { %s1461_s6 = scalar_select %p1142_p12, 1, 0 }
  0x12   : > { %s804_s8 = sshll.u32 %s1043_s21, 7  ;;  %s789_s9 = sshll.u32 %s187_s7, 3 }
  0x13   : > { %s1151_s12 = scalar_lea.hbm %s1448_s0, %s804_s8  ;;  %s191_s13 = scalar_lea.vmem [#allocation3], %s789_s9 }
  0x14   : > { %s199_s14 = sshll.u32 %s191_s13, 4  ;;  %p1155_p13 = pnand %p818_p10, %p1127_p5  ;;  %s1159_s14 = int_to_ptr.vmem [resolvable:$true] %s199_s14 }
  0x15   : > { %s188_s16 = scalar_lea.sflag [#allocation4], %s187_s7  ;;  %s951_s17 = scalar_lea.hbm %s1151_s12, 128 }
  0x16   : > { %p952_p2 = scmp.ne.s32.totalorder %s1151_s12, %s951_s17  ;;  %p953_p3 = pneg %p1155_p13 }
  0x17   : > { %s956_s26 = scalar_lea.hbm %s1448_s0, 256  ;;  %p957_p5 = scmp.lt.s32.totalorder %s1151_s12, %s1448_s0 }
  0x18   : > { %p954_p4 = pnand %p953_p3, %p952_p2  ;;  %p958_p8 = scmp.lt.s32.totalorder %s956_s26, %s951_s17 }
  0x1a   : > { %p955_p7 = pneg %p954_p4  ;;  %p959_p10 = por %p958_p8, %p957_p5 }
  0x1c   : > { %p960_p9 = pnand %p959_p10, %p955_p7 }
  0x1e   : > { %963 = shalt.err (!%p960_p9)
}
  0x1f   : > { %s964_s7 = scalar_lea.vmem %s1159_s14, 128  ;;  %s1045_s9 = smov [#allocation3]  }
  0x20   : > { %p965_p0 = scmp.ne.s32.totalorder %s1159_s14, %s964_s7  ;;  %s969_s10 = sshll.u32 %s1045_s9, 4  ;;  %s970_s10 = int_to_ptr.vmem [resolvable:$false] %s969_s10 }
  0x21   : > { %s971_s11 = scalar_lea.vmem %s970_s10, 256  ;;  %p972_p4 = scmp.lt.s32.totalorder %s1159_s14, %s970_s10 }
  0x22   : > { %p967_p1 = pnand %p965_p0, %p953_p3  ;;  %p973_p12 = scmp.lt.s32.totalorder %s971_s11, %s964_s7 }
  0x24   : > { %p968_p2 = pneg %p967_p1  ;;  %p974_p11 = por %p973_p12, %p972_p4 }
  0x26   : > { %p975_p6 = pnand %p974_p11, %p968_p2 }
  0x28   : > { %978 = shalt.err (!%p975_p6)
}
  0x29   : > { %813 = dma.hbm_to_vmem [thread:$0]  (!%p1155_p13), %s1151_s12, 128, %s1159_s14, %s188_s16  }
  0x2a   : > { %p1463_p9 = scmp.lt.s32.totalorder %s1043_s21, 3  ;;  %p1464_p7 = scmp.ge.s32.totalorder %s1043_s21, 1 }
  0x2c   : > { %p205_p0 = pnand %p1464_p7, %p1463_p9 }
  0x2d   : > { %s1186_s13 = sand.u32 (!%p205_p0), 1, %s1035_s19   ;;  %p1465_p6 = scmp.ne.s32.totalorder (!%p205_p0), %s1459_s29, 0 }
  0x2e   : > { %208 = sbr.rel (%p205_p0) target bundleno = 1032 (0x408), region = 40  ;;  %s793_s17 = sshll.u32 (!%p205_p0), %s1186_s13, 3 }
  0x2f   : > { %s211_s23 = scalar_lea.sflag (!%p205_p0), [#allocation4], %s1186_s13  ;;  %s214_s15 = scalar_lea.vmem (!%p205_p0), [#allocation3], %s793_s17 }
  0x33   : > { %1022 = dma.done.wait (%p1465_p6), %s211_s23, 128  }
  0x34   : > { %1024 = vsyncadd (%p1465_p6), %s211_s23, 4294967168  ;;  %vm285_vm0 = vcmask 134144   ;;  %vm287_vm1 = vcmask 273544   ;;  %v1046_v0 = vmov 0.0   ;;  %v1197_v1 = vld [vmem:[%s214_s15] sm:$0xff]  ;;  %s1047_s12 = smov 17   ;;  %v242_v16 = vlaneseq }
  0x35   : > { %286 = vst.msk [vmem:[#allocation2] sm:$0xf] %vm285_vm0, %v1046_v0  ;;  %291 = vrot.lane.b32.xlu0 %v1197_v1, %s1047_s12  ;;  %vm298_vm2 = vcmask 1043592   ;;  %vm299_vm3 = vcmask 1047556   ;;  %vm294_vm4 = vcmask 138240   ;;  %s1048_s29 = smov 94  }
  0x36   : > { %288 = vst.msk [vmem:[#allocation2 + $0x8] sm:$0xf] %vm287_vm1, %v1046_v0  ;;  %vm1201_vm5 = vmor %vm299_vm3, %vm298_vm2  ;;  %s1049_s14 = smov 110   ;;  %s1050_s16 = smov 96   ;;  %v1054_v14 = vmov 0   ;;  %v243_v17 = vand.u32 127, %v242_v16 }
  0x37   : > { %s1051_s25 = smov 111   ;;  %s1052_s26 = smov 95   ;;  %488 = vmatprep.mubr.bf16.mxu0 %v1054_v14  ;;  %903 = vset.pattern.permute.xlu1 %v1054_v14  ;;  %v439_v15 = vld [vmem:[%s1450_s2] sm:$0xf]  ;;  %vm343_vm6 = vcmask 900096   ;;  %vm356_vm8 = vcmask 785408  }
  0x38   : > { %s1053_s28 = smov 112   ;;  %s1055_s8 = smov 126   ;;  %684 = vmatprep.mubr.bf16.mxu1 %v1054_v14  ;;  %944 = vset.pattern.permute.xlu0 %v1054_v14  ;;  %v244_v20 = vadd.s32 128, %v243_v17  ;;  %v249_v24 = vand.u32 15, %v243_v17  ;;  %vm401_vm9 = vcmask 908288   ;;  %vm418_vm10 = vcmask 777216  }
  0x39   : > { %s1056_s7 = smov 127   ;;  %vm423_vm13 = vcmask 1043456   ;;  %vm369_vm14 = vcmask 769024   ;;  %vm449_vm1 = vcmask 1041408   ;;  %vm1456_vm2 = vcmask 916480   ;;  %s702_s9 = scalar_lea.sflag [#allocation5], %s1186_s13 }
  0x3a   : > { %v256_v23 = vand.u32 15, %v244_v20  ;;  %v1247_v30 = vadd.s32 1, %v249_v24  ;;  %v1249_v31 = vadd.s32 4294967295, %v249_v24  ;;  %vm1457_vm3 = vcmask 1031168   ;;  %p1472_p12 = scmp.ne.s32.totalorder %s1460_s30, 0  ;;  %s1057_s11 = smov [#allocation6]  }
  0x3c   : > { %v1245_v25 = vadd.s32 1, %v256_v23  ;;  %v1253_v37 = vadd.s32 4294967295, %v256_v23  ;;  %vm281_vm11 = vcmp.lt.s32.totalorder %v1247_v30, 16  ;;  %vm271_vm12 = vcmp.ge.s32.totalorder %v1249_v31, 0 }
  0x3e   : > { %vm282_vm7 = vcmp.lt.s32.totalorder %v1245_v25, 16  ;;  %vm272_vm15 = vcmp.ge.s32.totalorder %v1253_v37, 0  ;;  %v636_v37 = vld [vmem:[%s1451_s3] sm:$0x3] }
  0xa7   : > { %v292_v2 = vpop.permute.xlu0 %291 }
  0xa8   : > { %v293_v4 = vrot.slane %v292_v2, 4 }
  0xaa   : > { %v295_v5 = vsel %vm294_vm4, %v293_v4, %v292_v2  ;;  %302 = vst.msk [vmem:[#allocation2 + $0x8] sm:$0xf] %vm285_vm0, %v293_v4 }
  0xab   : > { %301 = vst.msk [vmem:[#allocation2] sm:$0xff] %vm1201_vm5, %v295_v5 }
  0xb1   : > { %v309_v6 = vld [vmem:[#allocation2 + $0x8] sm:$0xf] }
  0xb2   : > { %367 = vrot.lane.b32.xlu1 %v309_v6, %s1048_s29  ;;  %v1210_v7 = vld [vmem:[#allocation2] sm:$0xff]  ;;  %v377_v10 = vcombine.low %v309_v6, %v309_v6 }
  0xb3   : > { %337 = vrot.lane.b32.xlu0 %v1210_v7, %s1049_s14  ;;  %v1216_v8 = vcombine.high %v1210_v7, %v1210_v7  ;;  %v376_v13 = vcombine.low %v1210_v7, %v1210_v7 }
  0xb4   : > { %v863_v11 = vpack.i.bf16 %v377_v10, %v1210_v7 }
  0xb5   : > { %v873_v9 = vpack.i.bf16 %v309_v6, %v1216_v8  ;;  %v868_v12 = vpack.i.bf16 %v1216_v8, %v1210_v7 }
  0xb7   : > { %350 = vrot.lane.b32.xlu0 %v1210_v7, %s1050_s16  ;;  %874 = vrot.lane.b32.xlu1 %v873_v9, %s1049_s14 }
  0xbb   : > { %395 = vrot.lane.b32.xlu0 %v1210_v7, %s1051_s25  ;;  %879 = vrot.lane.b32.xlu1 %v873_v9, %s1050_s16 }
  0xbf   : > { %864 = vrot.lane.b32.xlu0 %v863_v11, %s1052_s26  ;;  %884 = vrot.lane.b32.xlu1 %v873_v9, %s1051_s25 }
  0xc3   : > { %889 = vrot.lane.b32.xlu1 %v873_v9, %s1053_s28  ;;  %869 = vrot.lane.b32.xlu0 %v868_v12, %s1048_s29 }
  0xc7   : > { %412 = vrot.lane.b32.xlu1 %v376_v13, %s1052_s26  ;;  %324 = vrot.lane.b32.xlu0 %v1210_v7, %s1053_s28 }
  0xcb   : > { %894 = vrot.lane.b32.xlu1 %v873_v9, %s1055_s8  ;;  %311 = vrot.lane.b32.xlu0 %v1210_v7, %s1055_s8 }
  0xcf   : > { %899 = vrot.lane.b32.xlu1 %v863_v11, %s1056_s7  ;;  %378 = vrot.lane.b32.xlu0 %v376_v13, %s1056_s7 }
  0xd3   : > { %442 = vperm.xlu1 %903, %v439_v15  }
 0x124   : > { %v368_v18 = vpop.permute.xlu1 %367 }
 0x125   : > { %v338_v19 = vpop.permute.xlu0 %337 }
 0x129   : > { %v351_v21 = vpop.permute.xlu0 %350  ;;  %v875_v22 = vpop.permute.xlu1 %874 }
 0x12a   : > { %v877_v26 = vunpack.i.h.bf16 %v875_v22  ;;  %v876_v27 = vunpack.i.l.bf16 %v875_v22 }
 0x12c   : > { %v345_v32 = vsel %vm343_vm6, %v876_v27, %v877_v26  ;;  %v344_v43 = vsel %vm343_vm6, %v338_v19, %v876_v27 }
 0x12d   : > { %v396_v28 = vpop.permute.xlu0 %395  ;;  %v880_v29 = vpop.permute.xlu1 %879  ;;  %v349_v42 = vsel %vm282_vm7, %v345_v32, 0.0  ;;  %v348_v52 = vsel %vm281_vm11, %v344_v43, 0.0 }
 0x12e   : > { %v882_v33 = vunpack.i.h.bf16 %v880_v29  ;;  %v881_v34 = vunpack.i.l.bf16 %v880_v29  ;;  %v409_v49 = vrot.slane %v349_v42, 4  ;;  %v408_v10 = vrot.slane %v348_v52, 4 }
 0x130   : > { %v358_v44 = vsel %vm356_vm8, %v881_v34, %v882_v33  ;;  %v357_v53 = vsel %vm356_vm8, %v351_v21, %v881_v34 }
 0x131   : > { %v865_v35 = vpop.permute.xlu0 %864  ;;  %v885_v36 = vpop.permute.xlu1 %884  ;;  %v362_v54 = vsel %vm272_vm15, %v358_v44, 0.0  ;;  %v361_v9 = vsel %vm271_vm12, %v357_v53, 0.0 }
 0x132   : > { %v867_v38 = vunpack.i.h.bf16 %v865_v35  ;;  %v866_v39 = vunpack.i.l.bf16 %v865_v35  ;;  %v887_v40 = vunpack.i.h.bf16 %v885_v36  ;;  %v886_v41 = vunpack.i.l.bf16 %v885_v36 }
 0x134   : > { %v403_v45 = vsel %vm401_vm9, %v886_v41, %v887_v40  ;;  %v420_v48 = vsel %vm418_vm10, %v866_v39, %v867_v38  ;;  %v402_v6 = vsel %vm401_vm9, %v396_v28, %v886_v41  ;;  %v307_v38 = vsel %vm271_vm12, %v1210_v7, 0.0  ;;  %v438_v7 = vld [vmem:[%s1449_s1] sm:$0x3] }
 0x135   : > { %v890_v46 = vpop.permute.xlu1 %889  ;;  %v870_v47 = vpop.permute.xlu0 %869  ;;  %v429_v57 = vsel %vm423_vm13, %v403_v45, %v409_v49  ;;  %v431_v58 = vsel %vm423_vm13, %v362_v54, %v420_v48  ;;  %v428_v20 = vsel %vm423_vm13, %v402_v6, %v408_v10  ;;  %v308_v40 = vsel %vm272_vm15, %v1216_v8, 0.0 }
 0x136   : > { %v872_v50 = vunpack.i.h.bf16 %v870_v47  ;;  %v871_v51 = vunpack.i.l.bf16 %v870_v47  ;;  %v892_v59 = vunpack.i.h.bf16 %v890_v46  ;;  %v891_v60 = vunpack.i.l.bf16 %v890_v46 }
 0x137   : > { %v435_v13 = vpack.c.bf16 %v431_v58, %v429_v57 }
 0x138   : > { %v371_v55 = vsel %vm369_vm14, %v872_v50, %v368_v18  ;;  %v370_v56 = vsel %vm369_vm14, %v871_v51, %v872_v50  ;;  %v332_v14 = vsel %vm1456_vm2, %v891_v60, %v892_v59 }
 0x139   : > { %v413_v61 = vpop.permute.xlu1 %412  ;;  %v325_v62 = vpop.permute.xlu0 %324  ;;  %v375_v63 = vsel %vm282_vm7, %v371_v55, 0.0  ;;  %v374_v0 = vsel %vm281_vm11, %v370_v56, 0.0  ;;  %v336_v26 = vsel %vm272_vm15, %v332_v14, 0.0 }
 0x13a   : > { %v419_v2 = vsel %vm418_vm10, %v413_v61, %v866_v39  ;;  %v437_v4 = vpack.c.bf16 %v375_v63, %v375_v63  ;;  %v436_v5 = vpack.c.bf16 %v374_v0, %v374_v0  ;;  %v331_v15 = vsel %vm1456_vm2, %v325_v62, %v891_v60 }
 0x13b   : > { %v430_v11 = vsel %vm423_vm13, %v361_v9, %v419_v2  ;;  %v335_v22 = vsel %vm271_vm12, %v331_v15, 0.0  ;;  %vm384_vm2 = vcmask 1039360   ;;  %v392_v36 = vrot.slane %v336_v26, 4 }
 0x13c   : > { %795 = vmatprep.subr.msk.bf16.mxu0 %vm449_vm1, %v437_v4  ;;  %v451_v12 = vsel %vm449_vm1, %v436_v5, 0  ;;  %v434_v21 = vpack.c.bf16 %v430_v11, %v428_v20  ;;  %v391_v34 = vrot.slane %v335_v22, 4  ;;  %v637_v5 = vld [vmem:[%s1452_s4] sm:$0xf] }
 0x13d   : > { %v895_v16 = vpop.permute.xlu1 %894  ;;  %v312_v17 = vpop.permute.xlu0 %311  ;;  %467 = vmatpush1.bf16.msra.mxu0 %v451_v12 }
 0x13e   : > { %v897_v18 = vunpack.i.h.bf16 %v895_v16  ;;  %v896_v19 = vunpack.i.l.bf16 %v895_v16  ;;  %468 = vmatprep.subr.bf16.mxu0 %v435_v13 }
 0x140   : > { %v318_v23 = vsel %vm1457_vm3, %v312_v17, %v896_v19  ;;  %v319_v24 = vsel %vm1457_vm3, %v896_v19, %v897_v18  ;;  %vm445_vm3 = vcmask 293888  }
 0x141   : > { %v900_v27 = vpop.permute.xlu1 %899  ;;  %469 = vmatpush1.bf16.msra.mxu0 %v434_v21  ;;  %v322_v28 = vsel %vm281_vm11, %v318_v23, 0.0  ;;  %v323_v33 = vsel %vm282_vm7, %v319_v24, 0.0  ;;  %v379_v35 = vpop.permute.xlu0 %378 }
 0x142   : > { %v902_v29 = vunpack.i.h.bf16 %v900_v27  ;;  %v901_v32 = vunpack.i.l.bf16 %v900_v27  ;;  %v427_v44 = vsel %vm423_vm13, %v323_v33, %v392_v36  ;;  %v426_v45 = vsel %vm423_vm13, %v322_v28, %v391_v34 }
 0x144   : > { %v385_v39 = vsel %vm384_vm2, %v379_v35, %v901_v32  ;;  %v386_v41 = vsel %vm384_vm2, %v901_v32, %v902_v29 }
 0x145   : > { %v424_v42 = vsel %vm423_vm13, %v307_v38, %v385_v39  ;;  %v425_v43 = vsel %vm423_vm13, %v308_v40, %v386_v41 }
 0x146   : > { %v433_v46 = vpack.c.bf16 %v427_v44, %v425_v43  ;;  %v432_v47 = vpack.c.bf16 %v426_v45, %v424_v42 }
 0x148   : > { %470 = vmatprep.subr.bf16.mxu0 %v433_v46 }
 0x149   : > { %471 = vmatpush1.bf16.msra.mxu0 %v432_v47 }
 0x14c   : > { %796 = vmatmul.mubr.msk.bf16.vlgmr.msra.gmra.mxu0 %vm445_vm3, %v438_v7 }
 0x14e   : > { %v443_v8 = vpop.permute.xlu1 %442 }
 0x20c   : > { %v490_v48 = vpop.f32.mrf.mxu0 }
 0x20d   : > { %v491_v49 = vadd.f32 %v490_v48, %v443_v8 }
 0x20e   : > { %v492_v50 = vpop.f32.mrf.mxu0 }
 0x20f   : > { %v493_v51 = vadd.f32 %v492_v50, %v443_v8  ;;  %v497_v53 = vmax.f32 %v491_v49, 0.0 }
 0x210   : > { %v494_v52 = vpop.f32.mrf.mxu0 }
 0x211   : > { %v498_v54 = vmax.f32 %v493_v51, 0.0 }
 0x212   : > { %v495_v55 = vpop.f32.mrf.mxu0 }
 0x213   : > { %v501_v56 = vcombine.low %v497_v53, %v498_v54 }
 0x215   : > { %502 = vrot.lane.b32.xlu0 %v501_v56, %s1047_s12 }
 0x287   : > { %v503_v57 = vpop.permute.xlu0 %502 }
 0x288   : > { %v504_v58 = vrot.slane %v503_v57, 4 }
 0x28a   : > { %v505_v59 = vsel %vm294_vm4, %v504_v58, %v503_v57  ;;  %509 = vst.msk [vmem:[#allocation2 + $0x8] sm:$0xf] %vm285_vm0, %v504_v58  ;;  %vm1468_vm0 = vcmask 916480  }
 0x28b   : > { %508 = vst.msk [vmem:[#allocation2] sm:$0xff] %vm1201_vm5, %v505_v59  ;;  %vm1469_vm4 = vmmov %vm1468_vm0  ;;  %vm1470_vm5 = vcmask 1031168  }
 0x291   : > { %v516_v60 = vld [vmem:[#allocation2 + $0x8] sm:$0xf] }
 0x292   : > { %570 = vrot.lane.b32.xlu0 %v516_v60, %s1048_s29  ;;  %v1319_v61 = vld [vmem:[#allocation2] sm:$0xff]  ;;  %v579_v0 = vcombine.low %v516_v60, %v516_v60 }
 0x293   : > { %v1323_v62 = vcombine.high %v1319_v61, %v1319_v61  ;;  %v578_v4 = vcombine.low %v1319_v61, %v1319_v61 }
 0x294   : > { %v904_v2 = vpack.i.bf16 %v579_v0, %v1319_v61 }
 0x295   : > { %v909_v63 = vpack.i.bf16 %v1323_v62, %v1319_v61  ;;  %v914_v3 = vpack.i.bf16 %v516_v60, %v1323_v62 }
 0x296   : > { %542 = vrot.lane.b32.xlu0 %v1319_v61, %s1049_s14 }
 0x297   : > { %910 = vrot.lane.b32.xlu1 %v909_v63, %s1048_s29 }
 0x29a   : > { %554 = vrot.lane.b32.xlu0 %v1319_v61, %s1050_s16 }
 0x29b   : > { %915 = vrot.lane.b32.xlu1 %v914_v3, %s1049_s14 }
 0x29e   : > { %596 = vrot.lane.b32.xlu0 %v1319_v61, %s1051_s25 }
 0x29f   : > { %920 = vrot.lane.b32.xlu1 %v914_v3, %s1050_s16  ;;  %s805_s16 = sshll.u32 %s1109_s22, 7  ;;  %s983_s22 = sshll.u32 %s1057_s11, 4  ;;  %s984_s22 = int_to_ptr.vmem [resolvable:$false] %s983_s22 }
 0x2a2   : > { %530 = vrot.lane.b32.xlu0 %v1319_v61, %s1053_s28 }
 0x2a3   : > { %925 = vrot.lane.b32.xlu1 %v914_v3, %s1051_s25  ;;  %s240_s25 = scalar_lea.vmem [#allocation6], %s793_s17  ;;  %s985_s17 = scalar_lea.vmem %s984_s22, 256 }
 0x2a6   : > { %905 = vrot.lane.b32.xlu0 %v904_v2, %s1052_s26 }
 0x2a7   : > { %930 = vrot.lane.b32.xlu1 %v914_v3, %s1053_s28 }
 0x2aa   : > { %518 = vrot.lane.b32.xlu0 %v1319_v61, %s1055_s8 }
 0x2ab   : > { %612 = vrot.lane.b32.xlu1 %v578_v4, %s1052_s26  ;;  %s716_s26 = sshll.u32 %s240_s25, 4  ;;  %s717_s26 = int_to_ptr.vmem [resolvable:$true] %s716_s26 }
 0x2ac   : > { %s979_s10 = scalar_lea.vmem %s717_s26, 128  ;;  %p986_p3 = scmp.lt.s32.totalorder %s717_s26, %s984_s22 }
 0x2ad   : > { %p980_p11 = scmp.ne.s32.totalorder %s717_s26, %s979_s10  ;;  %p987_p5 = scmp.lt.s32.totalorder %s985_s17, %s979_s10 }
 0x2ae   : > { %580 = vrot.lane.b32.xlu0 %v578_v4, %s1056_s7 }
 0x2af   : > { %935 = vrot.lane.b32.xlu1 %v914_v3, %s1055_s8  ;;  %p981_p13 = pnand %p980_p11, %p1472_p12  ;;  %p988_p8 = por %p987_p5, %p986_p3 }
 0x2b1   : > { %p982_p1 = pneg %p981_p13 }
 0x2b3   : > { %940 = vrot.lane.b32.xlu1 %v904_v2, %s1056_s7  ;;  %s714_s7 = scalar_lea.hbm %s1453_s5, %s805_s16  ;;  %p989_p10 = pnand %p988_p8, %p982_p1 }
 0x2b7   : > { %640 = vperm.xlu1 %903, %v637_v5  }
 0x304   : > { %v571_v6 = vpop.permute.xlu0 %570 }
 0x308   : > { %v543_v9 = vpop.permute.xlu0 %542 }
 0x309   : > { %v911_v10 = vpop.permute.xlu1 %910 }
 0x30a   : > { %v913_v11 = vunpack.i.h.bf16 %v911_v10  ;;  %v912_v12 = vunpack.i.l.bf16 %v911_v10 }
 0x30c   : > { %v555_v13 = vpop.permute.xlu0 %554  ;;  %v573_v14 = vsel %vm369_vm14, %v913_v11, %v571_v6  ;;  %v572_v15 = vsel %vm369_vm14, %v912_v12, %v913_v11 }
 0x30d   : > { %v916_v16 = vpop.permute.xlu1 %915  ;;  %v577_v17 = vsel %vm282_vm7, %v573_v14, 0.0  ;;  %v576_v18 = vsel %vm281_vm11, %v572_v15, 0.0 }
 0x30e   : > { %v635_v19 = vpack.c.bf16 %v577_v17, %v577_v17  ;;  %v634_v20 = vpack.c.bf16 %v576_v18, %v576_v18  ;;  %v918_v21 = vunpack.i.h.bf16 %v916_v16  ;;  %v917_v22 = vunpack.i.l.bf16 %v916_v16 }
 0x310   : > { %v597_v23 = vpop.permute.xlu0 %596  ;;  %797 = vmatprep.subr.msk.bf16.mxu1 %vm449_vm1, %v635_v19  ;;  %v647_v24 = vsel %vm449_vm1, %v634_v20, 0  ;;  %v549_v27 = vsel %vm343_vm6, %v917_v22, %v918_v21  ;;  %v548_v36 = vsel %vm343_vm6, %v543_v9, %v917_v22  ;;  %vm1471_vm6 = vmmov %vm1470_vm5  ;;  %v515_v22 = vsel %vm272_vm15, %v1323_v62, 0.0 }
 0x311   : > { %v921_v26 = vpop.permute.xlu1 %920  ;;  %663 = vmatpush1.bf16.msra.mxu1 %v647_v24  ;;  %v553_v38 = vsel %vm282_vm7, %v549_v27, 0.0  ;;  %v552_v45 = vsel %vm281_vm11, %v548_v36, 0.0 }
 0x312   : > { %v923_v28 = vunpack.i.h.bf16 %v921_v26  ;;  %v922_v29 = vunpack.i.l.bf16 %v921_v26  ;;  %v609_v46 = vrot.slane %v553_v38, 4  ;;  %v608_v51 = vrot.slane %v552_v45, 4 }
 0x314   : > { %v531_v32 = vpop.permute.xlu0 %530  ;;  %v561_v39 = vsel %vm356_vm8, %v922_v29, %v923_v28  ;;  %v560_v47 = vsel %vm356_vm8, %v555_v13, %v922_v29 }
 0x315   : > { %v926_v33 = vpop.permute.xlu1 %925  ;;  %v565_v8 = vsel %vm272_vm15, %v561_v39, 0.0  ;;  %v564_v56 = vsel %vm271_vm12, %v560_v47, 0.0 }
 0x316   : > { %v928_v34 = vunpack.i.h.bf16 %v926_v33  ;;  %v927_v35 = vunpack.i.l.bf16 %v926_v33 }
 0x318   : > { %v906_v40 = vpop.permute.xlu0 %905  ;;  %v603_v41 = vsel %vm401_vm9, %v927_v35, %v928_v34  ;;  %v602_v48 = vsel %vm401_vm9, %v597_v23, %v927_v35  ;;  %v514_v23 = vsel %vm271_vm12, %v1319_v61, 0.0 }
 0x319   : > { %v908_v42 = vunpack.i.h.bf16 %v906_v40  ;;  %v907_v43 = vunpack.i.l.bf16 %v906_v40  ;;  %v931_v44 = vpop.permute.xlu1 %930  ;;  %v627_v49 = vsel %vm423_vm13, %v603_v41, %v609_v46  ;;  %v626_v59 = vsel %vm423_vm13, %v602_v48, %v608_v51 }
 0x31a   : > { %v933_v52 = vunpack.i.h.bf16 %v931_v44  ;;  %v932_v53 = vunpack.i.l.bf16 %v931_v44 }
 0x31b   : > { %v619_v7 = vsel %vm418_vm10, %v907_v43, %v908_v42 }
 0x31c   : > { %v629_v50 = vsel %vm423_vm13, %v565_v8, %v619_v7  ;;  %v536_v63 = vsel %vm1468_vm0, %v531_v32, %v932_v53  ;;  %v537_v3 = vsel %vm1469_vm4, %v932_v53, %v933_v52  ;;  %v519_v0 = vpop.permute.xlu0 %518 }
 0x31d   : > { %v613_v54 = vpop.permute.xlu1 %612  ;;  %v633_v55 = vpack.c.bf16 %v629_v50, %v627_v49  ;;  %v540_v6 = vsel %vm271_vm12, %v536_v63, 0.0  ;;  %v541_v9 = vsel %vm272_vm15, %v537_v3, 0.0 }
 0x31e   : > { %v618_v57 = vsel %vm418_vm10, %v613_v54, %v907_v43  ;;  %v592_v17 = vrot.slane %v540_v6, 4  ;;  %v593_v18 = vrot.slane %v541_v9, 4 }
 0x31f   : > { %v628_v58 = vsel %vm423_vm13, %v564_v56, %v618_v57  ;;  %664 = vmatprep.subr.bf16.mxu1 %v633_v55 }
 0x320   : > { %v632_v60 = vpack.c.bf16 %v628_v58, %v626_v59  ;;  %v581_v19 = vpop.permute.xlu0 %580 }
 0x321   : > { %v936_v2 = vpop.permute.xlu1 %935 }
 0x322   : > { %v938_v4 = vunpack.i.h.bf16 %v936_v2  ;;  %v937_v5 = vunpack.i.l.bf16 %v936_v2  ;;  %665 = vmatpush1.bf16.msra.mxu1 %v632_v60 }
 0x324   : > { %v524_v10 = vsel %vm1470_vm5, %v519_v0, %v937_v5  ;;  %v525_v11 = vsel %vm1471_vm6, %v937_v5, %v938_v4 }
 0x325   : > { %v941_v12 = vpop.permute.xlu1 %940  ;;  %v529_v15 = vsel %vm282_vm7, %v525_v11, 0.0  ;;  %v528_v16 = vsel %vm281_vm11, %v524_v10, 0.0 }
 0x326   : > { %v943_v13 = vunpack.i.h.bf16 %v941_v12  ;;  %v942_v14 = vunpack.i.l.bf16 %v941_v12  ;;  %v625_v30 = vsel %vm423_vm13, %v529_v15, %v593_v18  ;;  %v624_v26 = vsel %vm423_vm13, %v528_v16, %v592_v17 }
 0x328   : > { %v586_v20 = vsel %vm384_vm2, %v581_v19, %v942_v14  ;;  %v587_v21 = vsel %vm384_vm2, %v942_v14, %v943_v13 }
 0x329   : > { %v623_v25 = vsel %vm423_vm13, %v515_v22, %v587_v21  ;;  %v622_v24 = vsel %vm423_vm13, %v514_v23, %v586_v20 }
 0x32a   : > { %v631_v27 = vpack.c.bf16 %v625_v30, %v623_v25  ;;  %v630_v28 = vpack.c.bf16 %v624_v26, %v622_v24 }
 0x32c   : > { %666 = vmatprep.subr.bf16.mxu1 %v631_v27 }
 0x32d   : > { %667 = vmatpush1.bf16.msra.mxu1 %v630_v28 }
 0x330   : > { %798 = vmatmul.mubr.msk.bf16.vlgmr.msra.gmra.mxu1 %vm445_vm3, %v636_v37 }
 0x332   : > { %v641_v31 = vpop.permute.xlu1 %640 }
 0x3f0   : > { %v686_v61 = vpop.f32.mrf.mxu1 }
 0x3f1   : > { %v687_v62 = vadd.f32 %v686_v61, %v641_v31 }
 0x3f2   : > { %v688_v29 = vpop.f32.mrf.mxu1 }
 0x3f3   : > { %v689_v32 = vadd.f32 %v688_v29, %v641_v31  ;;  %v693_v34 = vmul.f32 0.5, %v687_v62 }
 0x3f4   : > { %v690_v33 = vpop.f32.mrf.mxu1 }
 0x3f5   : > { %v694_v35 = vmul.f32 0.5, %v689_v32 }
 0x3f6   : > { %v691_v36 = vpop.f32.mrf.mxu1 }
 0x3f7   : > { %v697_v38 = vcombine.low %v693_v34, %v694_v35 }
 0x3f9   : > { %v699_v39 = vadd.f32 %v697_v38, %v1197_v1 }
 0x3fb   : > { %700 = vst [vmem:[%s240_s25] sm:$0xff] %v699_v39 }
 0x3fc   : > { %992 = shalt.err (!%p989_p10)
}
 0x3fd   : > { %s993_s23 = scalar_lea.hbm %s714_s7, 128  ;;  %s997_s12 = scalar_lea.hbm %s1453_s5, 256 }
 0x3fe   : > { %p994_p2 = scmp.ne.s32.totalorder %s714_s7, %s993_s23  ;;  %p998_p7 = scmp.lt.s32.totalorder %s714_s7, %s1453_s5 }
 0x3ff   : > { %p999_p0 = scmp.lt.s32.totalorder %s997_s12, %s993_s23 }
 0x400   : > { %p995_p4 = pnand %p994_p2, %p1472_p12 }
 0x401   : > { %p1000_p6 = por %p999_p0, %p998_p7 }
 0x402   : > { %p996_p9 = pneg %p995_p4 }
 0x404   : > { %p1001_p11 = pnand %p1000_p6, %p996_p9 }
 0x406   : > { %1004 = shalt.err (!%p1001_p11)
}
 0x407   : > { %808 = dma.vmem_to_hbm [thread:$0]  (%p1472_p12), %s717_s26, 128, %s714_s7, %s702_s9  }
 0x408 PF: > { %s728_s16 = sand.u32 1, %s1031_s18   ;;  %p1473_p13 = scmp.ne.s32.totalorder %s1461_s6, 0 }
 0x409   : > { %p1474_p1 = scmp.ge.s32.totalorder %s1043_s21, 2  ;;  %s729_s25 = scalar_lea.sflag [#allocation5], %s728_s16 }
 0x40b   : > { %p815_p3 = pnand %p1474_p1, %p1473_p13 }
 0x40d   : > { %p816_p5 = pneg %p815_p3 }
 0x40f   : > { %1026 = dma.done.wait (%p816_p5), %s729_s25, 128  }
 0x410   : > { %1028 = vsyncadd (%p816_p5), %s729_s25, 4294967168  ;;  %p18_p8 = scmp.ge.s32.totalorder %s1113_s24, 4   ;;  %s1475_s18 = smov %s1035_s19 }
 0x411   : > { %s1476_s19 = smov %s1039_s20  ;;  %s1477_s20 = smov %s1125_s27 }
 0x412   : > { %s1478_s21 = smov %s1113_s24  ;;  %20 = sbr.rel (!%p18_p8) target bundleno = 5 (0x5), region = 85 }
 0x417   :  { %734 = vsyncpa [#allocation4], 1 }
 0x418   :  { %736 = vsyncpa [#allocation4 + $0x1], 1 }
 0x419   :  { %737 = vsyncpa [#allocation5], 1 }
 0x41a   :  { %739 = vsyncpa [#allocation5 + $0x1], 1 }

</bundles_post_ra>
